<compile_context>
chip_gen: v5e
topology: v5e:2x2
jax: 0.10.0
libtpu: 0.0.40
codegen_flags: <defaults>
</compile_context>

<pallas_src>
import jax
import jax.numpy as jnp
from jax.experimental import pallas as pl
from jax.experimental.pallas import tpu as pltpu


def _round_up(x, m):
    return ((x + m - 1) // m) * m


def _vmem_limit(nbytes):
    # explicit scoped-VMEM budget: computed bytes + headroom, clamped
    return int(min(max(int(nbytes), 4 << 20), 100 << 20))


# ----------------------------------------------------------------------------
# Kernel A: fused frontEnd stand-in + LSTM input projection (bf16 MXU, f32 acc)
#   gates_x = (x @ W_fe) @ W_ih + b_comb        for all F*B frames at once
# ----------------------------------------------------------------------------
def frontend_gates_kernel(x_ref, wfe_ref, wih_ref, bcomb_ref, o_ref):
    feat = jnp.dot(x_ref[...], wfe_ref[...], preferred_element_type=jnp.float32)
    gates = jnp.dot(feat.astype(jnp.bfloat16), wih_ref[...],
                    preferred_element_type=jnp.float32) + bcomb_ref[...]
    o_ref[...] = gates.astype(o_ref.dtype)


def frontend_gates(x_flat_bf, w_fe_bf, wih_bf, b_comb):
    N, P = x_flat_bf.shape
    D_pad = w_fe_bf.shape[1]
    G_pad = wih_bf.shape[1]

    TM = 256 if N >= 256 else _round_up(N, 8)
    N_pad = _round_up(N, TM)
    if N_pad != N:
        x_flat_bf = jnp.pad(x_flat_bf, ((0, N_pad - N), (0, 0)))

    vmem = _vmem_limit(
        2.6 * (TM * P * 2 + TM * G_pad * 2
               + P * D_pad * 2 + D_pad * G_pad * 2 + G_pad * 4))

    out = pl.pallas_call(
        frontend_gates_kernel,
        out_shape=jax.ShapeDtypeStruct((N_pad, G_pad), jnp.bfloat16),
        grid_spec=pl.GridSpec(
            grid=(N_pad // TM,),
            in_specs=[
                pl.BlockSpec((TM, P), lambda i: (i, 0)),
                pl.BlockSpec((P, D_pad), lambda i: (0, 0)),
                pl.BlockSpec((D_pad, G_pad), lambda i: (0, 0)),
                pl.BlockSpec((1, G_pad), lambda i: (0, 0)),
            ],
            out_specs=pl.BlockSpec((TM, G_pad), lambda i: (i, 0)),
        ),
        compiler_params=pltpu.CompilerParams(
            dimension_semantics=("parallel",),
            vmem_limit_bytes=vmem,
        ),
    )(x_flat_bf, w_fe_bf, wih_bf, b_comb.reshape(1, G_pad))
    return out[:N]


# ----------------------------------------------------------------------------
# Kernel B: time-tiled LSTM recurrence + per-chunk fused output head.
# Gate layout: i, f, g, o — each in a 128-aligned H_pad-wide slab of 4*H_pad.
# ----------------------------------------------------------------------------
def _sigmoid_via_tanh(x):
    # sigmoid(x) == 0.5 * (tanh(0.5 * x) + 1)  — single EUP op on the hot path
    return 0.5 * (jnp.tanh(0.5 * x) + 1.0)


def lstm_head_kernel(gx_ref, whh_ref, wout_ref, bout_ref, o_ref,
                     h_sc, c_sc, hbuf_sc):
    TF, B_pad, _ = gx_ref.shape
    H_pad = whh_ref.shape[0]
    C_pad = wout_ref.shape[1]

    # h/c scratch persists across grid steps; init only on the first chunk.
    @pl.when(pl.program_id(0) == 0)
    def _():
        h_sc[...] = jnp.zeros_like(h_sc)
        c_sc[...] = jnp.zeros_like(c_sc)

    def step(t, carry):
        # only the recurrent matmul stays on the sequential critical path
        gates = gx_ref[t].astype(jnp.float32) + jnp.dot(
            h_sc[...].astype(jnp.bfloat16), whh_ref[...],
            preferred_element_type=jnp.float32)          # (B_pad, 4*H_pad)

        # 128-aligned gate slices (free lane-aligned vreg sub-selects)
        i = _sigmoid_via_tanh(gates[:, 0 * H_pad:1 * H_pad])
        f = _sigmoid_via_tanh(gates[:, 1 * H_pad:2 * H_pad])
        g = jnp.tanh(gates[:, 2 * H_pad:3 * H_pad])
        o = _sigmoid_via_tanh(gates[:, 3 * H_pad:4 * H_pad])

        c_new = f * c_sc[...] + i * g
        h_new = o * jnp.tanh(c_new)
        c_sc[...] = c_new
        h_sc[...] = h_new
        hbuf_sc[t] = h_new
        return carry

    jax.lax.fori_loop(0, TF, step, 0)

    # Fused output head for this time chunk only (lane-dense block store).
    h_flat = hbuf_sc[...].reshape(TF * B_pad, H_pad).astype(jnp.bfloat16)
    logits = jnp.dot(h_flat, wout_ref[...],
                     preferred_element_type=jnp.float32) + bout_ref[...]
    o_ref[...] = logits.reshape(TF, B_pad, C_pad)


def lstm_head(gates_tm_bf, whh_bf, wout_bf, b_out, *, tf):
    F_pad, B_pad, G_pad = gates_tm_bf.shape
    H_pad = whh_bf.shape[0]
    C_pad = wout_bf.shape[1]
    TF = tf
    assert F_pad % TF == 0 and G_pad == 4 * H_pad

    vmem = _vmem_limit(
        2.6 * (TF * B_pad * G_pad * 2 + TF * B_pad * C_pad * 4
               + H_pad * G_pad * 2 + H_pad * C_pad * 2 + C_pad * 4)
        + (2 * B_pad * H_pad + TF * B_pad * H_pad) * 4)

    return pl.pallas_call(
        lstm_head_kernel,
        out_shape=jax.ShapeDtypeStruct((F_pad, B_pad, C_pad), jnp.float32),
        grid_spec=pltpu.PrefetchScalarGridSpec(
            num_scalar_prefetch=0,
            grid=(F_pad // TF,),
            in_specs=[
                pl.BlockSpec((TF, B_pad, G_pad), lambda t: (t, 0, 0)),
                pl.BlockSpec((H_pad, G_pad), lambda t: (0, 0)),
                pl.BlockSpec((H_pad, C_pad), lambda t: (0, 0)),
                pl.BlockSpec((1, C_pad), lambda t: (0, 0)),
            ],
            out_specs=pl.BlockSpec((TF, B_pad, C_pad), lambda t: (t, 0, 0)),
            scratch_shapes=[
                pltpu.VMEM((B_pad, H_pad), jnp.float32),       # h state (persists)
                pltpu.VMEM((B_pad, H_pad), jnp.float32),       # c state (persists)
                pltpu.VMEM((TF, B_pad, H_pad), jnp.float32),   # h buffer for this chunk
            ],
        ),
        compiler_params=pltpu.CompilerParams(
            dimension_semantics=("arbitrary",),
            vmem_limit_bytes=vmem,
        ),
    )(gates_tm_bf, whh_bf, wout_bf, b_out.reshape(1, C_pad))


# ----------------------------------------------------------------------------
# Full forward: padding / layout plumbing in plain JAX, hot paths in Pallas.
# ----------------------------------------------------------------------------
def column_forward(x, params, *, time_tile=32):
    # x: (B, F, H_img, W_img)  -- mirrors PyTorch x[batch, frame, H, W]
    B, F, Hi, Wi = x.shape
    P = Hi * Wi
    D = params["w_fe"].shape[1]
    H = params["whh"].shape[0]
    C = params["w_out"].shape[1]

    D_pad = _round_up(D, 128)
    H_pad = _round_up(H, 128)
    C_pad = _round_up(C, 128)
    B_pad = _round_up(B, 8)
    G_pad = 4 * H_pad
    TF = time_tile if F >= time_tile else F
    F_pad = _round_up(F, TF)

    # ---- pad parameters to lane/sublane-aligned shapes (zeros keep math exact) ----
    w_fe_p = jnp.zeros((P, D_pad), jnp.float32).at[:, :D].set(params["w_fe"])
    b_fe_p = jnp.zeros((D_pad,), jnp.float32).at[:D].set(params["b_fe"])
    wih_p = jnp.zeros((D_pad, G_pad), jnp.float32)
    whh_p = jnp.zeros((H_pad, G_pad), jnp.float32)
    b_lstm_p = jnp.zeros((G_pad,), jnp.float32)
    for g in range(4):
        wih_p = wih_p.at[:D, g * H_pad:g * H_pad + H].set(
            params["wih"][:, g * H:(g + 1) * H])
        whh_p = whh_p.at[:H, g * H_pad:g * H_pad + H].set(
            params["whh"][:, g * H:(g + 1) * H])
        b_lstm_p = b_lstm_p.at[g * H_pad:g * H_pad + H].set(
            params["b_lstm"][g * H:(g + 1) * H])
    w_out_p = jnp.zeros((H_pad, C_pad), jnp.float32).at[:H, :C].set(params["w_out"])
    b_out_p = jnp.zeros((C_pad,), jnp.float32).at[:C].set(params["b_out"])

    # combined bias:  (x@Wfe + bfe)@Wih + b_lstm == (x@Wfe)@Wih + (bfe@Wih + b_lstm)
    b_comb = b_fe_p @ wih_p + b_lstm_p                       # (G_pad,), f32

    # bf16 MXU operands (f32 accumulation inside the kernels)
    w_fe_bf = w_fe_p.astype(jnp.bfloat16)
    wih_bf = wih_p.astype(jnp.bfloat16)
    whh_bf = whh_p.astype(jnp.bfloat16)
    w_out_bf = w_out_p.astype(jnp.bfloat16)

    # ---- 1. fused frontEnd + input projection, TIME-MAJOR from the start ----
    x_tm = jnp.transpose(x, (1, 0, 2, 3)).reshape(F * B, P).astype(jnp.bfloat16)
    gates = frontend_gates(x_tm, w_fe_bf, wih_bf, b_comb)    # (F*B, G_pad) bf16
    gates_tm = gates.reshape(F, B, G_pad)

    # ---- 2. pad batch (sublane) and time (tile) axes ----
    if B_pad != B or F_pad != F:
        gates_tm = jnp.pad(gates_tm, ((0, F_pad - F), (0, B_pad - B), (0, 0)))

    # ---- 3. time-tiled recurrence + per-chunk fused output head ----
    out_tm = lstm_head(gates_tm, whh_bf, w_out_bf, b_out_p, tf=TF)  # (F_pad,B_pad,C_pad)

    # ---- 4. un-pad, back to batch-major ----
    return jnp.transpose(out_tm[:F, :B, :C], (1, 0, 2))      # (B, F, C)


# pure-JAX f32 reference (same math, unpadded) for a silent sanity check
def column_reference(x, params):
    B, F, Hi, Wi = x.shape
    feat = x.reshape(B * F, Hi * Wi) @ params["w_fe"] + params["b_fe"]
    feat = feat.reshape(B, F, -1)
    H = params["whh"].shape[0]

    def step(carry, x_t):
        h, c = carry
        gates = x_t @ params["wih"] + h @ params["whh"] + params["b_lstm"]
        i, f, g, o = jnp.split(gates, 4, axis=-1)
        i = jax.nn.sigmoid(i)
        f = jax.nn.sigmoid(f)
        g = jnp.tanh(g)
        o = jax.nn.sigmoid(o)
        c = f * c + i * g
        h = o * jnp.tanh(c)
        return (h, c), h

    h0 = jnp.zeros((B, H), jnp.float32)
    c0 = jnp.zeros((B, H), jnp.float32)
    _, hs = jax.lax.scan(step, (h0, c0), jnp.transpose(feat, (1, 0, 2)))
    hs = jnp.transpose(hs, (1, 0, 2))
    return hs @ params["w_out"] + params["b_out"]


if __name__ == "__main__":
    # small demo shapes (real module: B=11, F=330, lastLayerSize=60, H=200, C=22)
    B, F, Hi, Wi = 2, 8, 16, 16
    D_FEAT, HID, CLS = 32, 32, 8
    P = Hi * Wi

    key = jax.random.PRNGKey(0)
    ks = jax.random.split(key, 8)
    params = {
        "w_fe":   0.05 * jax.random.normal(ks[0], (P, D_FEAT), jnp.float32),
        "b_fe":   0.05 * jax.random.normal(ks[1], (D_FEAT,), jnp.float32),
        "wih":    0.10 * jax.random.normal(ks[2], (D_FEAT, 4 * HID), jnp.float32),
        "whh":    0.10 * jax.random.normal(ks[3], (HID, 4 * HID), jnp.float32),
        # sum of PyTorch's b_ih + b_hh
        "b_lstm": 0.10 * jax.random.normal(ks[4], (4 * HID,), jnp.float32),
        "w_out":  0.10 * jax.random.normal(ks[5], (HID, CLS), jnp.float32),
        "b_out":  0.10 * jax.random.normal(ks[6], (CLS,), jnp.float32),
    }

    x = jax.random.normal(ks[7], (B, F, Hi, Wi), jnp.float32)

    out = column_forward(x, params)
    out = jax.block_until_ready(out)
    assert out.shape == (B, F, CLS), out.shape

    ref = column_reference(x, params)
    # bf16 MXU operands -> slightly looser tolerance than pure-f32
    assert jnp.allclose(out, ref, atol=3e-2, rtol=3e-2), "mismatch vs reference"

    print("KERNEL_OK")
</pallas_src>

<mosaic_0001>
module attributes {stable_mosaic.version = 11 : i64} {
  func.func @frontend_gates_kernel(%arg0: i32, %arg1: memref<16x256xbf16, #tpu.memory_space<vmem>>, %arg2: memref<256x128xbf16, #tpu.memory_space<vmem>>, %arg3: memref<128x512xbf16, #tpu.memory_space<vmem>>, %arg4: memref<1x512xf32, #tpu.memory_space<vmem>>, %arg5: memref<16x512xbf16, #tpu.memory_space<vmem>>) attributes {dimension_semantics = [#tpu.dimension_semantics<parallel>], iteration_bounds = array<i64: 1>, scalar_prefetch = 0 : i64, scratch_operands = 0 : i64, tpu.core_type = #tpu.core_type<tc>, window_params = [{transform_indices = @transform_0, window_bounds = array<i64: 16, 256>}, {pipeline_mode = #tpu.pipeline_mode<synchronous>, transform_indices = @transform_1, window_bounds = array<i64: 256, 128>}, {pipeline_mode = #tpu.pipeline_mode<synchronous>, transform_indices = @transform_2, window_bounds = array<i64: 128, 512>}, {pipeline_mode = #tpu.pipeline_mode<synchronous>, transform_indices = @transform_3, window_bounds = array<i64: 1, 512>}, {transform_indices = @transform_4, window_bounds = array<i64: 16, 512>}]} {
    %c0 = arith.constant 0 : index
    %c0_0 = arith.constant 0 : index
    %0 = vector.load %arg1[%c0, %c0_0] : memref<16x256xbf16, #tpu.memory_space<vmem>>, vector<16x256xbf16>
    %c0_1 = arith.constant 0 : index
    %c0_2 = arith.constant 0 : index
    %1 = vector.load %arg2[%c0_1, %c0_2] : memref<256x128xbf16, #tpu.memory_space<vmem>>, vector<256x128xbf16>
    %cst = arith.constant dense<0.000000e+00> : vector<16x128xf32>
    %2 = tpu.matmul %0, %1, %cst {dimension_numbers = #tpu.dot_dimension_numbers<[1], [0], [0], [1], [0, 0, 1, 1], [], []>} : vector<16x256xbf16>, vector<256x128xbf16>, vector<16x128xf32> -> vector<16x128xf32>
    %3 = arith.truncf %2 : vector<16x128xf32> to vector<16x128xbf16>
    %c0_3 = arith.constant 0 : index
    %c0_4 = arith.constant 0 : index
    %4 = vector.load %arg3[%c0_3, %c0_4] : memref<128x512xbf16, #tpu.memory_space<vmem>>, vector<128x512xbf16>
    %cst_5 = arith.constant dense<0.000000e+00> : vector<16x512xf32>
    %5 = tpu.matmul %3, %4, %cst_5 {dimension_numbers = #tpu.dot_dimension_numbers<[1], [0], [0], [1], [0, 0, 1, 1], [], []>} : vector<16x128xbf16>, vector<128x512xbf16>, vector<16x512xf32> -> vector<16x512xf32>
    %c0_6 = arith.constant 0 : index
    %c0_7 = arith.constant 0 : index
    %6 = vector.load %arg4[%c0_6, %c0_7] : memref<1x512xf32, #tpu.memory_space<vmem>>, vector<1x512xf32>
    %7 = vector.broadcast %6 : vector<1x512xf32> to vector<16x512xf32>
    %8 = arith.addf %5, %7 : vector<16x512xf32>
    %9 = arith.truncf %8 : vector<16x512xf32> to vector<16x512xbf16>
    %c0_8 = arith.constant 0 : index
    %c0_9 = arith.constant 0 : index
    %10 = vector.load %arg5[%c0_8, %c0_9] : memref<16x512xbf16, #tpu.memory_space<vmem>>, vector<16x512xbf16>
    tpu.vector_store %arg5[%c0_8, %c0_9], %9 {strides = array<i32>} : memref<16x512xbf16, #tpu.memory_space<vmem>>, vector<16x512xbf16>,
    return
  }
  func.func @transform_0(%arg0: i32) -> (i32, i32) {
    %c0_i32 = arith.constant 0 : i32
    %c0_i32_0 = arith.constant 0 : i32
    return %arg0, %c0_i32 : i32, i32
  }
  func.func @transform_1(%arg0: i32) -> (i32, i32) {
    %c0_i32 = arith.constant 0 : i32
    %c0_i32_0 = arith.constant 0 : i32
    %c0_i32_1 = arith.constant 0 : i32
    return %c0_i32, %c0_i32_0 : i32, i32
  }
  func.func @transform_2(%arg0: i32) -> (i32, i32) {
    %c0_i32 = arith.constant 0 : i32
    %c0_i32_0 = arith.constant 0 : i32
    %c0_i32_1 = arith.constant 0 : i32
    return %c0_i32, %c0_i32_0 : i32, i32
  }
  func.func @transform_3(%arg0: i32) -> (i32, i32) {
    %c0_i32 = arith.constant 0 : i32
    %c0_i32_0 = arith.constant 0 : i32
    %c0_i32_1 = arith.constant 0 : i32
    return %c0_i32, %c0_i32_0 : i32, i32
  }
  func.func @transform_4(%arg0: i32) -> (i32, i32) {
    %c0_i32 = arith.constant 0 : i32
    %c0_i32_0 = arith.constant 0 : i32
    return %arg0, %c0_i32 : i32, i32
  }
}

</mosaic_0001>

<bundles_post_ra>
// kernel: tpu_custom_call.1
= control target key start
LH: loop header
LB: loop body
LE: loop exit
PB: predicated region body
PF: predicated region fallthrough
CT: control target
= control target key end

     0   :  { %9 = vsyncpa [#allocation3], 0  ;;  %s981_s0 = inlined_call_operand.hbm [shape: bf16[16,256], index: 0, kind: input, shape index: {}]   ;;  %s982_s1 = inlined_call_operand.hbm [shape: bf16[256,128], index: 1, kind: input, shape index: {}]   ;;  %s983_s2 = inlined_call_operand.hbm [shape: bf16[128,512], index: 2, kind: input, shape index: {}]   ;;  %s984_s3 = inlined_call_operand.hbm [shape: f32[1,512], index: 3, kind: input, shape index: {}]   ;;  %s985_s4 = inlined_call_operand.hbm [shape: bf16[16,512], index: 4, kind: output, shape index: {}]  }
   0x1   :  { %10 = vsyncpa [#allocation6], 0 }
   0x2   :  { %11 = vsyncpa [#allocation9], 0  ;;  %s30_s17 = sshll.u32 %s982_s1, 4  ;;  %s31_s17 = int_to_ptr.hbm [resolvable:$true] %s30_s17 }
   0x3   :  { %12 = vsyncpa [#allocation4], 0  ;;  %s924_s18 = smov [#allocation5]   ;;  %s17_s22 = sshll.u32 %s981_s0, 4  ;;  %s18_s22 = int_to_ptr.hbm [resolvable:$true] %s17_s22 }
   0x4   :  { %s32_s19 = sshll.u32 %s924_s18, 4  ;;  %s925_s23 = smov 64   ;;  %s33_s19 = int_to_ptr.vmem [resolvable:$true] %s32_s19 }
   0x5   :  { %s926_s24 = smov 4   ;;  %s927_s25 = smov [#allocation2]  }
   0x6   :  { %38 = dma.hbm_to_vmem [thread:$0]  %s31_s17, 2048, %s33_s19, [#allocation6], %s925_s23, %s925_s23, %s926_s24  }
   0x7   :  { %s19_s26 = sshll.u32 %s927_s25, 4  ;;  %s928_s27 = smov 128   ;;  %s20_s26 = int_to_ptr.vmem [resolvable:$true] %s19_s26 }
   0x8   :  { %s929_s28 = smov 8   ;;  %s43_s30 = sshll.u32 %s983_s2, 4  ;;  %s44_s30 = int_to_ptr.hbm [resolvable:$true] %s43_s30 }
   0x9   :  { %25 = dma.hbm_to_vmem [thread:$0]  %s18_s22, 256, %s20_s26, [#allocation3], %s928_s27, %s928_s27, %s929_s28  }
   0xa   :  { %s930_s5 = smov [#allocation7]   ;;  %s57_s8 = sshll.u32 %s984_s3, 4  ;;  %s58_s8 = int_to_ptr.hbm [resolvable:$true] %s57_s8 }
   0xb   :  { %s45_s6 = sshll.u32 %s930_s5, 4  ;;  %s931_s9 = smov 256   ;;  %s46_s6 = int_to_ptr.vmem [resolvable:$true] %s45_s6 }
   0xc   :  { %s932_s10 = smov 16   ;;  %s933_s11 = smov [#allocation8]  }
   0xd   :  { %51 = dma.hbm_to_vmem [thread:$0]  %s44_s30, 4096, %s46_s6, [#allocation6], %s931_s9, %s931_s9, %s932_s10  }
   0xe   :  { %s59_s12 = sshll.u32 %s933_s11, 4  ;;  %s60_s12 = int_to_ptr.vmem [resolvable:$true] %s59_s12 }
   0xf   :  { %62 = dma.hbm_to_vmem [thread:$0]  %s58_s8, 64, %s60_s12, [#allocation9]  }
  0x10   :  { %916 = dma.done.wait [#allocation3], 256  }
  0x11   :  { %917 = vsyncadd [#allocation3], 4294967040 }
  0x12   :  { %918 = dma.done.wait [#allocation6], 6144  }
  0x13   :  { %919 = vsyncadd [#allocation6], 4294961152 }
  0x14   :  { %920 = dma.done.wait [#allocation9], 64  }
  0x15   :  { %921 = vsyncadd [#allocation9], 4294967232  ;;  %v744_v0 = vld [vmem:[#allocation5 + $0x38] sm:$0xff]  ;;  %v743_v2 = vld [vmem:[#allocation5 + $0x30] sm:$0xff]  ;;  %s934_s2 = smov [#allocation10]   ;;  %s520_s15 = sshll.u32 %s985_s4, 4  ;;  %s521_s15 = int_to_ptr.hbm [resolvable:$true] %s520_s15 }
  0x16   :  { %v752_v1 = vld [vmem:[#allocation5 + $0x78] sm:$0xff]  ;;  %219 = vmatpush.bf16.msra.mxu0 %v744_v0  ;;  %v751_v3 = vld [vmem:[#allocation5 + $0x70] sm:$0xff]  ;;  %v742_v4 = vld [vmem:[#allocation5 + $0x28] sm:$0xff]  ;;  %s518_s3 = sshll.u32 %s934_s2, 4  ;;  %s519_s3 = int_to_ptr.vmem [resolvable:$true] %s518_s3 }
  0x17   :  { %233 = vmatpush.bf16.msra.mxu1 %v752_v1  ;;  %v750_v5 = vld [vmem:[#allocation5 + $0x68] sm:$0xff]  ;;  %v721_v6 = vld [vmem:[#allocation7 + $0xe0] sm:$0xf]  ;;  %v783_v7 = vld [vmem:[#allocation7 + $0xec] sm:$0xf0] }
  0x18   :  { %v781_v8 = vld [vmem:[#allocation7 + $0xe4] sm:$0xf]  ;;  %v723_v9 = vld [vmem:[#allocation7 + $0xf0] sm:$0xf0]  ;;  %v722_v10 = vor.u32 %v783_v7, %v721_v6  ;;  %v705_v13 = vld [vmem:[#allocation7 + $0xc0] sm:$0xf] }
  0x19   :  { %v726_v11 = vor.u32 %v781_v8, %v723_v9  ;;  %v741_v12 = vld [vmem:[#allocation5 + $0x20] sm:$0xff]  ;;  %v779_v14 = vld [vmem:[#allocation7 + $0xcc] sm:$0xf0]  ;;  %v707_v17 = vld [vmem:[#allocation7 + $0xd0] sm:$0xf0] }
  0x1a   :  { %220 = vmatpush.bf16.msra.mxu0 %v743_v2  ;;  %v749_v15 = vld [vmem:[#allocation5 + $0x60] sm:$0xff]  ;;  %450 = vmatpush.bf16.msra.mxu2 %v722_v10  ;;  %v706_v18 = vor.u32 %v779_v14, %v705_v13  ;;  %v775_v21 = vld [vmem:[#allocation7 + $0xac] sm:$0xf0]  ;;  %v691_v23 = vld [vmem:[#allocation7 + $0xb0] sm:$0xf0] }
  0x1b   :  { %234 = vmatpush.bf16.msra.mxu1 %v751_v3  ;;  %v777_v16 = vld [vmem:[#allocation7 + $0xc4] sm:$0xf]  ;;  %464 = vmatpush.bf16.msra.mxu3 %v726_v11  ;;  %v689_v20 = vld [vmem:[#allocation7 + $0xa0] sm:$0xf]  ;;  %v740_v24 = vld [vmem:[#allocation5 + $0x18] sm:$0xff] }
  0x1c   :  { %v710_v19 = vor.u32 %v777_v16, %v707_v17  ;;  %v773_v22 = vld [vmem:[#allocation7 + $0xa4] sm:$0xf]  ;;  %v748_v25 = vld [vmem:[#allocation5 + $0x58] sm:$0xff]  ;;  %v690_v26 = vor.u32 %v775_v21, %v689_v20  ;;  %v673_v28 = vld [vmem:[#allocation7 + $0x80] sm:$0xf] }
  0x1d   :  { %v694_v27 = vor.u32 %v773_v22, %v691_v23  ;;  %v771_v29 = vld [vmem:[#allocation7 + $0x8c] sm:$0xf0]  ;;  %v769_v30 = vld [vmem:[#allocation7 + $0x84] sm:$0xf]  ;;  %v675_v31 = vld [vmem:[#allocation7 + $0x90] sm:$0xf0] }
  0x1e   :  { %221 = vmatpush.bf16.msra.mxu0 %v742_v4  ;;  %451 = vmatpush.bf16.msra.mxu2 %v706_v18  ;;  %v739_v32 = vld [vmem:[#allocation5 + $0x10] sm:$0xff]  ;;  %v674_v34 = vor.u32 %v771_v29, %v673_v28  ;;  %v678_v35 = vor.u32 %v769_v30, %v675_v31  ;;  %v657_v36 = vld [vmem:[#allocation7 + $0x60] sm:$0xf]  ;;  %v765_v38 = vld [vmem:[#allocation7 + $0x64] sm:$0xf] }
  0x1f   :  { %235 = vmatpush.bf16.msra.mxu1 %v750_v5  ;;  %465 = vmatpush.bf16.msra.mxu3 %v710_v19  ;;  %v747_v33 = vld [vmem:[#allocation5 + $0x50] sm:$0xff]  ;;  %v738_v40 = vld [vmem:[#allocation5 + $0x8] sm:$0xff]  ;;  %v784_v45 = vld [vmem:[#allocation7 + $0xf4] sm:$0xf0] }
  0x20   :  { %v767_v37 = vld [vmem:[#allocation7 + $0x6c] sm:$0xf0]  ;;  %v659_v39 = vld [vmem:[#allocation7 + $0x70] sm:$0xf0]  ;;  %v746_v41 = vld [vmem:[#allocation5 + $0x48] sm:$0xff] }
  0x21   :  { %v729_v42 = vld [vmem:[#allocation7 + $0xe8] sm:$0xf]  ;;  %v658_v43 = vor.u32 %v767_v37, %v657_v36  ;;  %v662_v44 = vor.u32 %v765_v38, %v659_v39  ;;  %v782_v46 = vld [vmem:[#allocation7 + $0xec] sm:$0xf]  ;;  %v731_v47 = vld [vmem:[#allocation7 + $0xf8] sm:$0xf0] }
  0x22   :  { %222 = vmatpush.bf16.msra.mxu0 %v741_v12  ;;  %452 = vmatpush.bf16.msra.mxu2 %v690_v26  ;;  %v737_v48 = vld [vmem:[#allocation5] sm:$0xff]  ;;  %v537_v50 = vld [vmem:[#allocation2] sm:$0xf]  ;;  %v736_v51 = vld [vmem:[#allocation2 + $0x4] sm:$0xf0]  ;;  %v730_v54 = vor.u32 %v784_v45, %v729_v42  ;;  %v734_v55 = vor.u32 %v782_v46, %v731_v47 }
  0x23   :  { %236 = vmatpush.bf16.msra.mxu1 %v749_v15  ;;  %466 = vmatpush.bf16.msra.mxu3 %v694_v27  ;;  %v745_v49 = vld [vmem:[#allocation5 + $0x40] sm:$0xff]  ;;  %v735_v52 = vld [vmem:[#allocation2 + $0x4] sm:$0xf]  ;;  %v539_v53 = vld [vmem:[#allocation2 + $0x8] sm:$0xf0]  ;;  %v538_v60 = vor.u32 %v736_v51, %v537_v50 }
  0x24   :  { %v713_v56 = vld [vmem:[#allocation7 + $0xc8] sm:$0xf]  ;;  %v780_v57 = vld [vmem:[#allocation7 + $0xd4] sm:$0xf0]  ;;  %v778_v58 = vld [vmem:[#allocation7 + $0xcc] sm:$0xf]  ;;  %v542_v61 = vor.u32 %v735_v52, %v539_v53 }
  0x25   :  { %v715_v59 = vld [vmem:[#allocation7 + $0xd8] sm:$0xf0]  ;;  %v714_v62 = vor.u32 %v780_v57, %v713_v56  ;;  %v697_v0 = vld [vmem:[#allocation7 + $0xa8] sm:$0xf]  ;;  %v776_v1 = vld [vmem:[#allocation7 + $0xb4] sm:$0xf0] }
  0x26   :  { %223 = vmatpush.bf16.msra.mxu0 %v740_v24  ;;  %453 = vmatpush.bf16.msra.mxu2 %v674_v34  ;;  %v718_v63 = vor.u32 %v778_v58, %v715_v59  ;;  %v774_v2 = vld [vmem:[#allocation7 + $0xac] sm:$0xf]  ;;  %v699_v3 = vld [vmem:[#allocation7 + $0xb8] sm:$0xf0]  ;;  %v698_v4 = vor.u32 %v776_v1, %v697_v0  ;;  %v681_v6 = vld [vmem:[#allocation7 + $0x88] sm:$0xf] }
  0x27   :  { %237 = vmatpush.bf16.msra.mxu1 %v748_v25  ;;  %467 = vmatpush.bf16.msra.mxu3 %v678_v35  ;;  %v702_v5 = vor.u32 %v774_v2, %v699_v3  ;;  %v772_v7 = vld [vmem:[#allocation7 + $0x94] sm:$0xf0]  ;;  %v770_v8 = vld [vmem:[#allocation7 + $0x8c] sm:$0xf]  ;;  %v683_v9 = vld [vmem:[#allocation7 + $0x98] sm:$0xf0] }
  0x28   :  { %v682_v10 = vor.u32 %v772_v7, %v681_v6  ;;  %v686_v11 = vor.u32 %v770_v8, %v683_v9  ;;  %v665_v12 = vld [vmem:[#allocation7 + $0x68] sm:$0xf]  ;;  %v768_v13 = vld [vmem:[#allocation7 + $0x74] sm:$0xf0]  ;;  %v766_v14 = vld [vmem:[#allocation7 + $0x6c] sm:$0xf] }
  0x29   :  { %v667_v15 = vld [vmem:[#allocation7 + $0x78] sm:$0xf0]  ;;  %v666_v16 = vor.u32 %v768_v13, %v665_v12  ;;  %v641_v18 = vld [vmem:[#allocation7 + $0x40] sm:$0xf]  ;;  %v763_v19 = vld [vmem:[#allocation7 + $0x4c] sm:$0xf0] }
  0x2a   :  { %224 = vmatpush.bf16.msra.mxu0 %v739_v32  ;;  %454 = vmatpush.bf16.msra.mxu2 %v658_v43  ;;  %v670_v17 = vor.u32 %v766_v14, %v667_v15  ;;  %v761_v20 = vld [vmem:[#allocation7 + $0x44] sm:$0xf]  ;;  %v642_v21 = vor.u32 %v763_v19, %v641_v18  ;;  %v643_v22 = vld [vmem:[#allocation7 + $0x50] sm:$0xf0]  ;;  %v649_v23 = vld [vmem:[#allocation7 + $0x48] sm:$0xf] }
  0x2b   :  { %238 = vmatpush.bf16.msra.mxu1 %v747_v33  ;;  %468 = vmatpush.bf16.msra.mxu3 %v662_v44  ;;  %v764_v24 = vld [vmem:[#allocation7 + $0x54] sm:$0xf0]  ;;  %v646_v25 = vor.u32 %v761_v20, %v643_v22  ;;  %v762_v27 = vld [vmem:[#allocation7 + $0x4c] sm:$0xf]  ;;  %v651_v28 = vld [vmem:[#allocation7 + $0x58] sm:$0xf0] }
  0x2c   :  { %v650_v26 = vor.u32 %v764_v24, %v649_v23  ;;  %v625_v29 = vld [vmem:[#allocation7 + $0x20] sm:$0xf]  ;;  %v654_v30 = vor.u32 %v762_v27, %v651_v28  ;;  %v759_v31 = vld [vmem:[#allocation7 + $0x2c] sm:$0xf0]  ;;  %v757_v32 = vld [vmem:[#allocation7 + $0x24] sm:$0xf] }
  0x2d   :  { %v627_v33 = vld [vmem:[#allocation7 + $0x30] sm:$0xf0]  ;;  %v626_v34 = vor.u32 %v759_v31, %v625_v29  ;;  %v633_v36 = vld [vmem:[#allocation7 + $0x28] sm:$0xf]  ;;  %v760_v37 = vld [vmem:[#allocation7 + $0x34] sm:$0xf0] }
  0x2e   :  { %225 = vmatpush.bf16.msra.mxu0 %v738_v40  ;;  %455 = vmatpush.bf16.msra.mxu2 %v642_v21  ;;  %v630_v35 = vor.u32 %v757_v32, %v627_v33  ;;  %v758_v38 = vld [vmem:[#allocation7 + $0x2c] sm:$0xf]  ;;  %v634_v39 = vor.u32 %v760_v37, %v633_v36  ;;  %v635_v40 = vld [vmem:[#allocation7 + $0x38] sm:$0xf0]  ;;  %v609_v42 = vld [vmem:[#allocation7] sm:$0xf] }
  0x2f   :  { %239 = vmatpush.bf16.msra.mxu1 %v746_v41  ;;  %469 = vmatpush.bf16.msra.mxu3 %v646_v25  ;;  %v638_v41 = vor.u32 %v758_v38, %v635_v40  ;;  %v755_v43 = vld [vmem:[#allocation7 + $0xc] sm:$0xf0]  ;;  %v753_v44 = vld [vmem:[#allocation7 + $0x4] sm:$0xf]  ;;  %v611_v46 = vld [vmem:[#allocation7 + $0x10] sm:$0xf0] }
  0x30   :  { %v610_v45 = vor.u32 %v755_v43, %v609_v42  ;;  %v617_v47 = vld [vmem:[#allocation7 + $0x8] sm:$0xf]  ;;  %v754_v51 = vld [vmem:[#allocation7 + $0xc] sm:$0xf]  ;;  %v619_v52 = vld [vmem:[#allocation7 + $0x18] sm:$0xf0] }
  0x31   :  { %v622_v53 = vor.u32 %v754_v51, %v619_v52 }
  0x32   :  { %226 = vmatpush.bf16.msra.mxu0 %v737_v48  ;;  %456 = vmatpush.bf16.msra.mxu2 %v626_v34  ;;  %v756_v48 = vld [vmem:[#allocation7 + $0x14] sm:$0xf0] }
  0x33   :  { %240 = vmatpush.bf16.msra.mxu1 %v745_v49  ;;  %470 = vmatpush.bf16.msra.mxu3 %v630_v35  ;;  %v614_v49 = vor.u32 %v753_v44, %v611_v46  ;;  %v618_v50 = vor.u32 %v756_v48, %v617_v47 }
  0x35   :  { %227 = vmatmul.bf16.vlgmr.msra.gmra.mxu0 %v538_v60 }
  0x36   :  { %478 = vmatpush.bf16.msrb.mxu0 %v730_v54  ;;  %241 = vmatmul.bf16.vlgmr.msra.gmra.mxu1 %v542_v61  ;;  %v280_v61 = vld [vmem:[#allocation8] sm:$0xf] }
  0x37   :  { %492 = vmatpush.bf16.msrb.mxu1 %v734_v55  ;;  %457 = vmatpush.bf16.msra.mxu2 %v610_v45 }
  0x38   :  { %471 = vmatpush.bf16.msra.mxu3 %v614_v49 }
  0x3a   :  { %479 = vmatpush.bf16.msrb.mxu0 %v714_v62  ;;  %v284_v62 = vperm.slane %v280_v61, 2 }
  0x3b   :  { %493 = vmatpush.bf16.msrb.mxu1 %v718_v63  ;;  %v285_v63 = vperm.slane %v280_v61, 3 }
  0x3e   :  { %480 = vmatpush.bf16.msrb.mxu0 %v698_v4  ;;  %v282_v4 = vperm.slane %v280_v61, 0 }
  0x3f   :  { %494 = vmatpush.bf16.msrb.mxu1 %v702_v5  ;;  %v283_v5 = vperm.slane %v280_v61, 1 }
  0x42   :  { %481 = vmatpush.bf16.msrb.mxu0 %v682_v10 }
  0x43   :  { %495 = vmatpush.bf16.msrb.mxu1 %v686_v11 }
  0x46   :  { %482 = vmatpush.bf16.msrb.mxu0 %v666_v16 }
  0x47   :  { %496 = vmatpush.bf16.msrb.mxu1 %v670_v17 }
  0x4a   :  { %483 = vmatpush.bf16.msrb.mxu0 %v650_v26 }
  0x4b   :  { %497 = vmatpush.bf16.msrb.mxu1 %v654_v30 }
  0x4e   :  { %484 = vmatpush.bf16.msrb.mxu0 %v634_v39 }
  0x4f   :  { %498 = vmatpush.bf16.msrb.mxu1 %v638_v41 }
  0x52   :  { %485 = vmatpush.bf16.msrb.mxu0 %v618_v50 }
  0x53   :  { %499 = vmatpush.bf16.msrb.mxu1 %v622_v53 }
  0xb2   :  { %v228_v54 = vpop.f32.mrf.mxu0 }
  0xb3   :  { %v242_v55 = vpop.f32.mrf.mxu1 }
  0xb4   :  { %v243_v58 = vadd.f32 %v242_v55, %v228_v54 }
  0xba   :  { %v230_v56 = vpop.f32.mrf.mxu0 }
  0xbb   :  { %v244_v57 = vpop.f32.mrf.mxu1 }
  0xbc   :  { %v245_v59 = vadd.f32 %v244_v57, %v230_v56 }
  0xbe   :  { %v247_v60 = vpack.c.bf16 %v245_v59, %v243_v58 }
  0xc0   :  { %458 = vmatmul.bf16.vlgmr.msra.gmra.mxu2 %v247_v60  ;;  %472 = vmatmul.bf16.vlgmr.msra.gmra.mxu3 %v247_v60 }
  0xc1   :  { %486 = vmatmul.bf16.vlgmr.msrb.gmra.mxu0 %v247_v60  ;;  %500 = vmatmul.bf16.vlgmr.msrb.gmra.mxu1 %v247_v60 }
 0x13e   :  { %v487_v0 = vpop.f32.mrf.mxu0  ;;  %v501_v1 = vpop.f32.mrf.mxu1 }
 0x13f   :  { %v488_v2 = vadd.f32 %v487_v0, %v284_v62  ;;  %v502_v3 = vadd.f32 %v501_v1, %v285_v63 }
 0x141   :  { %v507_v6 = vpack.c.bf16 %v502_v3, %v488_v2 }
 0x143   :  { %511 = vst [vmem:[#allocation10 + $0x8] sm:$0xff] %v507_v6  ;;  %v459_v7 = vpop.f32.mrf.mxu2  ;;  %v473_v8 = vpop.f32.mrf.mxu3 }
 0x144   :  { %v460_v9 = vadd.f32 %v459_v7, %v282_v4  ;;  %v474_v10 = vadd.f32 %v473_v8, %v283_v5 }
 0x146   :  { %v506_v11 = vpack.c.bf16 %v474_v10, %v460_v9  ;;  %v489_v12 = vpop.f32.mrf.mxu0  ;;  %v503_v13 = vpop.f32.mrf.mxu1 }
 0x147   :  { %v490_v14 = vadd.f32 %v489_v12, %v284_v62  ;;  %v504_v15 = vadd.f32 %v503_v13, %v285_v63 }
 0x148   :  { %510 = vst [vmem:[#allocation10] sm:$0xff] %v506_v11 }
 0x149   :  { %v509_v16 = vpack.c.bf16 %v504_v15, %v490_v14 }
 0x14b   :  { %513 = vst [vmem:[#allocation10 + $0x18] sm:$0xff] %v509_v16  ;;  %v461_v17 = vpop.f32.mrf.mxu2  ;;  %v475_v18 = vpop.f32.mrf.mxu3 }
 0x14c   :  { %v462_v19 = vadd.f32 %v461_v17, %v282_v4  ;;  %v476_v20 = vadd.f32 %v475_v18, %v283_v5 }
 0x14e   :  { %v508_v21 = vpack.c.bf16 %v476_v20, %v462_v19 }
 0x150   :  { %512 = vst [vmem:[#allocation10 + $0x10] sm:$0xff] %v508_v21 }
 0x151   :  { %526 = dma.vmem_to_hbm [thread:$0]  %s519_s3, 512, %s521_s15, [#allocation4], %s931_s9, %s931_s9, %s932_s10  }
 0x152   :  { %922 = dma.done.wait [#allocation4], 512  }
 0x153   :  { %923 = vsyncadd [#allocation4], 4294966784 }
 0x154   :  { %531 = vsyncpa [#allocation3], 1 }
 0x155   :  { %532 = vsyncpa [#allocation6], 1 }
 0x156   :  { %533 = vsyncpa [#allocation9], 1 }
 0x157   :  { %534 = vsyncpa [#allocation4], 1 }

</bundles_post_ra>
